<compile_context>
chip_gen: v5e
topology: v5e:2x2
jax: 0.10.0
libtpu: 0.0.40
codegen_flags: <defaults>
</compile_context>

<pallas_src>
import functools

import jax
import jax.numpy as jnp
from jax.experimental import pallas as pl
from jax.experimental.pallas import tpu as pltpu

_LANE = 128
_SUBLANE = 8


def _round_up(x, m):
    return (x + m - 1) // m * m


def _critic_kernel(x_ref, w1_ref, b1_ref, w2_ref, b2_ref, w3_ref, b3_ref, o_ref):
    # fc1: single K=in_dim matmul (concat already fused in the wrapper).
    # Operands may be bf16 (v6e/v7x fast path); accumulation stays f32.
    h1 = jnp.dot(x_ref[...].astype(w1_ref.dtype), w1_ref[...],
                 preferred_element_type=jnp.float32) + b1_ref[...]
    h1 = jnp.maximum(h1, 0.0)

    # fc2 + ReLU (elementwise math stays f32; only the dot operands narrow).
    h2 = jnp.dot(h1.astype(w2_ref.dtype), w2_ref[...],
                 preferred_element_type=jnp.float32) + b2_ref[...]
    h2 = jnp.maximum(h2, 0.0)

    # fc3 (output width 1): VPU multiply + XLU lane reduction instead of an
    # N=1 MXU matmul. b3 is a scalar read from SMEM. Store (tb, 1) directly
    # (no transpose).
    q = jnp.sum(h2 * w3_ref[...], axis=-1, keepdims=True) + b3_ref[0]
    o_ref[...] = q.astype(o_ref.dtype)


@functools.partial(jax.jit, static_argnames=("block_batch",))
def critic_forward(state, action, kernel_params, *, block_batch=1024):
    """Fused Critic forward pass; returns q of shape (batch, 1)."""
    w1, b1, w2, b2, w3_row, b3 = kernel_params
    batch = state.shape[0]
    in_dim = state.shape[1] + action.shape[1]
    hp = w1.shape[1]

    # Fuse the torch.cat in the wrapper: the extra HBM traffic is batch*64 B,
    # while splitting fc1 into two dots would double its MXU passes.
    x = jnp.concatenate([state, action], axis=-1)

    # Tile selection:
    #  * tiles are multiples of 8 sublanes only (output block is (tb, 1));
    #  * >= 2 tiles once batch >= 256 so v7x's two TensorCores both get work;
    #  * tb = round_up(cdiv(batch, n_tiles), 8) minimizes padded rows.
    n_tiles = max(-(-batch // block_batch), 2 if batch >= 256 else 1)
    tb = _round_up(-(-batch // n_tiles), _SUBLANE)
    padded_batch = _round_up(batch, tb)
    if padded_batch != batch:
        x = jnp.pad(x, ((0, padded_batch - batch), (0, 0)))
    num_tiles = padded_batch // tb

    # Weights/biases: full-array blocks with constant index maps -> loaded into
    # VMEM once and kept resident across all batch tiles.
    const = lambda shape: pl.BlockSpec(shape, lambda i: (0,) * len(shape))

    weight_bytes = sum(int(a.size) * a.dtype.itemsize
                       for a in (w1, b1, w2, b2, w3_row, b3))
    cost = pl.CostEstimate(
        flops=2 * padded_batch * (in_dim * hp + hp * hp + hp),
        transcendentals=0,
        bytes_accessed=weight_bytes + padded_batch * (in_dim + 1) * 4,
    )

    out = pl.pallas_call(
        _critic_kernel,
        out_shape=jax.ShapeDtypeStruct((padded_batch, 1), jnp.float32),
        grid_spec=pltpu.PrefetchScalarGridSpec(
            num_scalar_prefetch=0,
            grid=(num_tiles,),
            in_specs=[
                pl.BlockSpec((tb, in_dim), lambda i: (i, 0)),
                const(w1.shape),
                const(b1.shape),
                const(w2.shape),
                const(b2.shape),
                const(w3_row.shape),
                pl.BlockSpec(memory_space=pltpu.MemorySpace.SMEM),
            ],
            out_specs=pl.BlockSpec((tb, 1), lambda i: (i, 0)),
        ),
        compiler_params=pltpu.CompilerParams(
            dimension_semantics=("parallel",),
            vmem_limit_bytes=48 << 20,  # safe on v7x (64 MiB), plenty on v5e/v6e
        ),
        cost_estimate=cost,
    )(x, w1, b1, w2, b2, w3_row, b3)

    return out[:batch]  # (batch, 1)


def init_critic_params(key, state_dim, action_dim, hidden_dim=256):
    """nn.Linear-style init (uniform +/- 1/sqrt(fan_in)).

    Weights are stored as [in_features, out_features]; biases as [1, out].
    """
    in_dim = state_dim + action_dim
    k1, k2, k3, k4, k5, k6 = jax.random.split(key, 6)

    def unif(k, shape, fan_in):
        bound = 1.0 / jnp.sqrt(jnp.float32(fan_in))
        return jax.random.uniform(k, shape, jnp.float32, -bound, bound)

    w1 = unif(k1, (in_dim, hidden_dim), in_dim)
    b1 = unif(k2, (1, hidden_dim), in_dim)
    w2 = unif(k3, (hidden_dim, hidden_dim), hidden_dim)
    b2 = unif(k4, (1, hidden_dim), hidden_dim)
    w3 = unif(k5, (hidden_dim, 1), hidden_dim)
    b3 = unif(k6, (1, 1), hidden_dim)
    return (w1, b1, w2, b2, w3, b3)


def prepare_critic_params(params, *, lane=_LANE, matmul_dtype=jnp.float32):
    """One-time prep: zero-pad the hidden dim to a multiple of 128 lanes
    (exactly semantics-preserving: padded units have zero weights/bias) and
    optionally store the matmul weights in bf16 for the v6e/v7x MXU fast path
    (f32 accumulation + f32 elementwise in-kernel)."""
    w1, b1, w2, b2, w3, b3 = params
    hidden = w1.shape[1]
    hp = _round_up(hidden, lane)
    pad_c = lambda m: jnp.pad(m, ((0, 0), (0, hp - m.shape[1])))
    pad_r = lambda m: jnp.pad(m, ((0, hp - m.shape[0]), (0, 0)))

    w1p = pad_c(w1).astype(matmul_dtype)          # (in_dim, Hp)
    b1p = pad_c(b1)                               # (1, Hp)  f32
    w2p = pad_c(pad_r(w2)).astype(matmul_dtype)   # (Hp, Hp)
    b2p = pad_c(b2)                               # (1, Hp)  f32
    w3_row = pad_c(w3.T)                          # (1, Hp)  f32 (VPU path)
    b3s = b3.reshape((1,)).astype(jnp.float32)    # (1,)     SMEM scalar
    return (w1p, b1p, w2p, b2p, w3_row, b3s)


def critic_reference(state, action, params):
    """Pure-JAX reference matching the PyTorch module."""
    w1, b1, w2, b2, w3, b3 = params
    x = jnp.concatenate([state, action], axis=-1)
    h1 = jnp.maximum(x @ w1 + b1, 0.0)
    h2 = jnp.maximum(h1 @ w2 + b2, 0.0)
    return h2 @ w3 + b3


if __name__ == "__main__":
    # Small shapes consistent with the module: state_dim=12, action_dim=4,
    # hidden_dim=32, batch=8.
    batch, state_dim, action_dim, hidden_dim = 8, 12, 4, 32

    key = jax.random.PRNGKey(0)
    k_params, k_state, k_action, k_state2, k_action2 = jax.random.split(key, 5)

    params = init_critic_params(k_params, state_dim, action_dim, hidden_dim)
    kernel_params = prepare_critic_params(params)

    # 1) tiny batch (single grid tile)
    state = jax.random.normal(k_state, (batch, state_dim), jnp.float32)
    action = jax.random.normal(k_action, (batch, action_dim), jnp.float32)
    q = jax.block_until_ready(critic_forward(state, action, kernel_params))
    q_ref = critic_reference(state, action, params)
    assert q.shape == (batch, 1)
    assert jnp.allclose(q, q_ref, atol=1e-4, rtol=1e-4), "mismatch vs reference (small batch)"

    # 2) odd-sized larger batch exercising the multi-tile "parallel" grid path
    #    (>= 2 tiles so v7x megacore sharding kicks in; tb rounds to 8, not 128,
    #    so padding waste stays small).
    big = 300
    state2 = jax.random.normal(k_state2, (big, state_dim), jnp.float32)
    action2 = jax.random.normal(k_action2, (big, action_dim), jnp.float32)
    q2 = jax.block_until_ready(critic_forward(state2, action2, kernel_params))
    q2_ref = critic_reference(state2, action2, params)
    assert q2.shape == (big, 1)
    assert jnp.allclose(q2, q2_ref, atol=1e-4, rtol=1e-4), "mismatch vs reference (tiled batch)"

    # 3) optional bf16-matmul-operand path (MXU fast path on v6e/v7x); f32
    #    accumulation, looser tolerance.
    kernel_params_bf16 = prepare_critic_params(params, matmul_dtype=jnp.bfloat16)
    q3 = jax.block_until_ready(critic_forward(state2, action2, kernel_params_bf16))
    assert q3.shape == (big, 1)
    assert jnp.allclose(q3, q2_ref, atol=5e-2, rtol=5e-2), "mismatch vs reference (bf16 operands)"

    print("KERNEL_OK")
</pallas_src>

<mosaic_0001>
module attributes {stable_mosaic.version = 11 : i64} {
  func.func @_critic_kernel(%arg0: i32, %arg1: memref<8x16xf32, #tpu.memory_space<vmem>>, %arg2: memref<16x128xf32, #tpu.memory_space<vmem>>, %arg3: memref<1x128xf32, #tpu.memory_space<vmem>>, %arg4: memref<128x128xf32, #tpu.memory_space<vmem>>, %arg5: memref<1x128xf32, #tpu.memory_space<vmem>>, %arg6: memref<1x128xf32, #tpu.memory_space<vmem>>, %arg7: memref<1xf32, #tpu.memory_space<smem>>, %arg8: memref<8x1xf32, #tpu.memory_space<vmem>>) attributes {dimension_semantics = [#tpu.dimension_semantics<parallel>], iteration_bounds = array<i64: 1>, scalar_prefetch = 0 : i64, scratch_operands = 0 : i64, tpu.core_type = #tpu.core_type<tc>, window_params = [{transform_indices = @transform_0, window_bounds = array<i64: 8, 16>}, {pipeline_mode = #tpu.pipeline_mode<synchronous>, transform_indices = @transform_1, window_bounds = array<i64: 16, 128>}, {pipeline_mode = #tpu.pipeline_mode<synchronous>, transform_indices = @transform_2, window_bounds = array<i64: 1, 128>}, {pipeline_mode = #tpu.pipeline_mode<synchronous>, transform_indices = @transform_3, window_bounds = array<i64: 128, 128>}, {pipeline_mode = #tpu.pipeline_mode<synchronous>, transform_indices = @transform_4, window_bounds = array<i64: 1, 128>}, {pipeline_mode = #tpu.pipeline_mode<synchronous>, transform_indices = @transform_5, window_bounds = array<i64: 1, 128>}, {transform_indices = @transform_6, window_bounds = array<i64: 1>}, {transform_indices = @transform_7, window_bounds = array<i64: 8, 1>}]} {
    %c0 = arith.constant 0 : index
    %c0_0 = arith.constant 0 : index
    %0 = vector.load %arg1[%c0, %c0_0] : memref<8x16xf32, #tpu.memory_space<vmem>>, vector<8x16xf32>
    %c0_1 = arith.constant 0 : index
    %c0_2 = arith.constant 0 : index
    %1 = vector.load %arg2[%c0_1, %c0_2] : memref<16x128xf32, #tpu.memory_space<vmem>>, vector<16x128xf32>
    %cst = arith.constant dense<0.000000e+00> : vector<8x128xf32>
    %2 = tpu.matmul %0, %1, %cst {dimension_numbers = #tpu.dot_dimension_numbers<[1], [0], [0], [1], [0, 0, 1, 1], [], []>} : vector<8x16xf32>, vector<16x128xf32>, vector<8x128xf32> -> vector<8x128xf32>
    %c0_3 = arith.constant 0 : index
    %c0_4 = arith.constant 0 : index
    %3 = vector.load %arg3[%c0_3, %c0_4] : memref<1x128xf32, #tpu.memory_space<vmem>>, vector<1x128xf32>
    %4 = vector.broadcast %3 : vector<1x128xf32> to vector<8x128xf32>
    %5 = arith.addf %2, %4 : vector<8x128xf32>
    %cst_5 = arith.constant 0.000000e+00 : f32
    %6 = vector.broadcast %cst_5 : f32 to vector<8x128xf32>
    %7 = arith.maximumf %5, %6 : vector<8x128xf32>
    %c0_6 = arith.constant 0 : index
    %c0_7 = arith.constant 0 : index
    %8 = vector.load %arg4[%c0_6, %c0_7] : memref<128x128xf32, #tpu.memory_space<vmem>>, vector<128x128xf32>
    %cst_8 = arith.constant dense<0.000000e+00> : vector<8x128xf32>
    %9 = tpu.matmul %7, %8, %cst_8 {dimension_numbers = #tpu.dot_dimension_numbers<[1], [0], [0], [1], [0, 0, 1, 1], [], []>} : vector<8x128xf32>, vector<128x128xf32>, vector<8x128xf32> -> vector<8x128xf32>
    %c0_9 = arith.constant 0 : index
    %c0_10 = arith.constant 0 : index
    %10 = vector.load %arg5[%c0_9, %c0_10] : memref<1x128xf32, #tpu.memory_space<vmem>>, vector<1x128xf32>
    %11 = vector.broadcast %10 : vector<1x128xf32> to vector<8x128xf32>
    %12 = arith.addf %9, %11 : vector<8x128xf32>
    %cst_11 = arith.constant 0.000000e+00 : f32
    %13 = vector.broadcast %cst_11 : f32 to vector<8x128xf32>
    %14 = arith.maximumf %12, %13 : vector<8x128xf32>
    %c0_12 = arith.constant 0 : index
    %c0_13 = arith.constant 0 : index
    %15 = vector.load %arg6[%c0_12, %c0_13] : memref<1x128xf32, #tpu.memory_space<vmem>>, vector<1x128xf32>
    %16 = vector.broadcast %15 : vector<1x128xf32> to vector<8x128xf32>
    %17 = arith.mulf %14, %16 : vector<8x128xf32>
    %cst_14 = arith.constant dense<0.000000e+00> : vector<8xf32>
    %18 = vector.multi_reduction <add>, %17, %cst_14 [1] : vector<8x128xf32> to vector<8xf32>
    %19 = vector.shape_cast %18 : vector<8xf32> to vector<8x1xf32>
    %c0_15 = arith.constant 0 : index
    %20 = memref.load %arg7[%c0_15] : memref<1xf32, #tpu.memory_space<smem>>
    %21 = vector.broadcast %20 : f32 to vector<8x1xf32>
    %22 = arith.addf %19, %21 : vector<8x1xf32>
    %c0_16 = arith.constant 0 : index
    %c0_17 = arith.constant 0 : index
    %23 = vector.load %arg8[%c0_16, %c0_17] : memref<8x1xf32, #tpu.memory_space<vmem>>, vector<8x1xf32>
    tpu.vector_store %arg8[%c0_16, %c0_17], %22 {strides = array<i32>} : memref<8x1xf32, #tpu.memory_space<vmem>>, vector<8x1xf32>,
    return
  }
  func.func @transform_0(%arg0: i32) -> (i32, i32) {
    %c0_i32 = arith.constant 0 : i32
    %c0_i32_0 = arith.constant 0 : i32
    return %arg0, %c0_i32 : i32, i32
  }
  func.func @transform_1(%arg0: i32) -> (i32, i32) {
    %c0_i32 = arith.constant 0 : i32
    %c0_i32_0 = arith.constant 0 : i32
    %c0_i32_1 = arith.constant 0 : i32
    return %c0_i32, %c0_i32_0 : i32, i32
  }
  func.func @transform_2(%arg0: i32) -> (i32, i32) {
    %c0_i32 = arith.constant 0 : i32
    %c0_i32_0 = arith.constant 0 : i32
    %c0_i32_1 = arith.constant 0 : i32
    return %c0_i32, %c0_i32_0 : i32, i32
  }
  func.func @transform_3(%arg0: i32) -> (i32, i32) {
    %c0_i32 = arith.constant 0 : i32
    %c0_i32_0 = arith.constant 0 : i32
    %c0_i32_1 = arith.constant 0 : i32
    return %c0_i32, %c0_i32_0 : i32, i32
  }
  func.func @transform_4(%arg0: i32) -> (i32, i32) {
    %c0_i32 = arith.constant 0 : i32
    %c0_i32_0 = arith.constant 0 : i32
    %c0_i32_1 = arith.constant 0 : i32
    return %c0_i32, %c0_i32_0 : i32, i32
  }
  func.func @transform_5(%arg0: i32) -> (i32, i32) {
    %c0_i32 = arith.constant 0 : i32
    %c0_i32_0 = arith.constant 0 : i32
    %c0_i32_1 = arith.constant 0 : i32
    return %c0_i32, %c0_i32_0 : i32, i32
  }
  func.func @transform_6(%arg0: i32) -> i32 {
    %c0_i32 = arith.constant 0 : i32
    %c0_i32_0 = arith.constant 0 : i32
    return %c0_i32 : i32
  }
  func.func @transform_7(%arg0: i32) -> (i32, i32) {
    %c0_i32 = arith.constant 0 : i32
    %c0_i32_0 = arith.constant 0 : i32
    return %arg0, %c0_i32 : i32, i32
  }
}

</mosaic_0001>

<bundles_post_ra>
// kernel: critic_forward.1
= control target key start
LH: loop header
LB: loop body
LE: loop exit
PB: predicated region body
PF: predicated region fallthrough
CT: control target
= control target key end

     0   :  { %13 = vsyncpa [#allocation4], 0  ;;  %s166_s27 = smov [#allocation3]   ;;  %s167_s29 = smov 128   ;;  %s236_s0 = inlined_call_operand.vmem [shape: f32[8,16], index: 0, kind: input, shape index: {}]   ;;  %s237_s1 = inlined_call_operand.vmem [shape: f32[16,128], index: 1, kind: input, shape index: {}]   ;;  %s238_s2 = inlined_call_operand.vmem [shape: f32[1,128], index: 2, kind: input, shape index: {}]   ;;  %s239_s3 = inlined_call_operand.hbm [shape: f32[128,128], index: 3, kind: input, shape index: {}]   ;;  %s240_s4 = inlined_call_operand.vmem [shape: f32[1,128], index: 4, kind: input, shape index: {}]   ;;  %s241_s5 = inlined_call_operand.vmem [shape: f32[1,128], index: 5, kind: input, shape index: {}]   ;;  %s242_s6 = inlined_call_operand.<no memory space> [shape: f32[1], index: 6, kind: input, shape index: {}]   ;;  %s243_s7 = inlined_call_operand.vmem [shape: f32[8,1], index: 7, kind: output, shape index: {}]  }
   0x1   :  { %s24_s26 = sshll.u32 %s239_s3, 4  ;;  %s26_s28 = sshll.u32 %s166_s27, 4  ;;  %s25_s26 = int_to_ptr.hbm [resolvable:$true] %s24_s26  ;;  %s27_s28 = int_to_ptr.vmem [resolvable:$true] %s26_s28 }
   0x2   :  { %s168_s30 = smov 8  }
   0x3   :  { %32 = dma.hbm_to_vmem [thread:$0]  %s25_s26, 2048, %s27_s28, [#allocation4], %s167_s29, %s167_s29, %s168_s30  }
   0x4   :  { %164 = dma.done.wait [#allocation4], 2048  }
   0x5   :  { %165 = vsyncadd [#allocation4], 4294965248  ;;  %v45_v0 = vld [vmem:[%s237_s1 + $0x8] sm:$0xff]  ;;  %v44_v1 = vld [vmem:[%s237_s1] sm:$0xff]  ;;  %vm50_vm0 = vcmask 130048   ;;  %v124_v29 = vstv %s242_s6  ;;  %vm126_vm1 = vcmask 7168  }
   0x6   :  { %68 = vmatpush.msra.mxu0 %v45_v0  ;;  %v43_v2 = vld [vmem:[%s236_s0] sm:$0xff]  ;;  %v90_v3 = vld [vmem:[#allocation3 + $0x78] sm:$0xff]  ;;  %v89_v4 = vld [vmem:[#allocation3 + $0x70] sm:$0xff] }
   0x7   :  { %95 = vmatpush.msra.mxu1 %v90_v3  ;;  %v88_v5 = vld [vmem:[#allocation3 + $0x68] sm:$0xff]  ;;  %v87_v6 = vld [vmem:[#allocation3 + $0x60] sm:$0xff]  ;;  %v86_v7 = vld [vmem:[#allocation3 + $0x58] sm:$0xff] }
   0x8   :  { %69 = vmatpush.msra.mxu0 %v44_v1  ;;  %v85_v8 = vld [vmem:[#allocation3 + $0x50] sm:$0xff]  ;;  %v84_v9 = vld [vmem:[#allocation3 + $0x48] sm:$0xff]  ;;  %v83_v10 = vld [vmem:[#allocation3 + $0x40] sm:$0xff] }
   0x9   :  { %133 = vmatmul.msk.f32.vlgmr.msra.gmra.mxu0 %vm50_vm0, %v43_v2  ;;  %96 = vmatpush.msra.mxu1 %v89_v4  ;;  %v82_v11 = vld [vmem:[#allocation3 + $0x38] sm:$0xff]  ;;  %v81_v12 = vld [vmem:[#allocation3 + $0x30] sm:$0xff]  ;;  %v80_v13 = vld [vmem:[#allocation3 + $0x28] sm:$0xff] }
   0xa   :  { %v79_v14 = vld [vmem:[#allocation3 + $0x20] sm:$0xff]  ;;  %v78_v15 = vld [vmem:[#allocation3 + $0x18] sm:$0xff]  ;;  %v77_v16 = vld [vmem:[#allocation3 + $0x10] sm:$0xff] }
   0xb   :  { %97 = vmatpush.msra.mxu1 %v88_v5  ;;  %v76_v17 = vld [vmem:[#allocation3 + $0x8] sm:$0xff]  ;;  %v75_v18 = vld [vmem:[#allocation3] sm:$0xff] }
   0xc   :  { %v137_v19 = vld [vmem:[%s238_s2] ss:$0 sm:$0xff] }
   0xd   :  { %98 = vmatpush.msra.mxu1 %v87_v6  ;;  %v138_v23 = vld [vmem:[%s240_s4] ss:$0 sm:$0xff] }
   0xe   :  { %v139_v26 = vld [vmem:[%s241_s5] ss:$0 sm:$0xff] }
   0xf   :  { %99 = vmatpush.msra.mxu1 %v86_v7 }
  0x11   :  { %100 = vmatpush.msra.mxu1 %v85_v8 }
  0x13   :  { %101 = vmatpush.msra.mxu1 %v84_v9 }
  0x15   :  { %102 = vmatpush.msra.mxu1 %v83_v10 }
  0x17   :  { %103 = vmatpush.msra.mxu1 %v82_v11 }
  0x19   :  { %104 = vmatpush.msra.mxu1 %v81_v12 }
  0x1b   :  { %105 = vmatpush.msra.mxu1 %v80_v13 }
  0x1d   :  { %106 = vmatpush.msra.mxu1 %v79_v14 }
  0x1f   :  { %107 = vmatpush.msra.mxu1 %v78_v15 }
  0x21   :  { %108 = vmatpush.msra.mxu1 %v77_v16 }
  0x23   :  { %109 = vmatpush.msra.mxu1 %v76_v17 }
  0x25   :  { %110 = vmatpush.msra.mxu1 %v75_v18 }
  0x86   :  { %v71_v20 = vpop.f32.mrf.mxu0 }
  0x87   :  { %v72_v21 = vadd.f32 %v137_v19, %v71_v20 }
  0x89   :  { %v74_v22 = vmax.f32 %v72_v21, 0.0 }
  0x8b   :  { %111 = vmatmul.f32.vlgmr.msra.gmra.mxu1 %v74_v22 }
 0x108   :  { %v112_v24 = vpop.f32.mrf.mxu1 }
 0x109   :  { %v113_v25 = vadd.f32 %v138_v23, %v112_v24 }
 0x10b   :  { %v115_v27 = vmax.f32 %v113_v25, 0.0 }
 0x10d   :  { %v120_v28 = vmul.f32 %v139_v26, %v115_v27 }
 0x10f   :  { %121 = vadd.xlane.f32.xlu0 %v120_v28 }
 0x182   :  { %v122_v30 = vpop.xlane.xlu0 %121 }
 0x183   :  { %v125_v31 = vadd.f32 %v124_v29, %v122_v30 }
 0x185   :  { %127 = vst.msk [vmem:[%s243_s7] sm:$0xff] %vm126_vm1, %v125_v31 }
 0x186   :  { %132 = vsyncpa [#allocation4], 1 }

</bundles_post_ra>
